<compile_context>
chip_gen: v7x
topology: tpu7x:2x2x1
jax: 0.10.0
libtpu: 0.0.40
codegen_flags: <defaults>
</compile_context>

<pallas_src>
import jax
import jax.numpy as jnp
from jax.experimental import pallas as pl
from jax.experimental.pallas import tpu as pltpu

IN_DIM = 28 * 28  # 784, flattened raw image (kernel input features)
K_RAW = 14 * 14   # 196, conv output / fc1 input features
K_PAD = 256       # conv-matmul output padded 196 -> 256 (lane-aligned, VMEM only)
N_RAW = 10        # fc2 outputs
N_PAD = 128       # fc2 output dim padded 10 -> 128 (lane-dense stores)
H_DIM = 64        # fc1 outputs


def _round_up(n, m):
    return (n + m - 1) // m * m


def _conv_as_matmul(conv_w):
    """Fold Conv2d(1,1,k=2,stride=2) on a 28x28 image into a (784, 196) matrix.

    Wc[q, p] = conv_w[0,0,di,dj]  where q = (2i+di)*28 + (2j+dj), p = i*14+j,
    and 0 elsewhere, so that  (x.reshape(B,784) @ Wc)[b, p] == conv1(x)[b,0,i,j].
    """
    w = conv_w.reshape(2, 2).astype(jnp.float32)                  # (2, 2)
    eye3 = jnp.eye(K_RAW, dtype=jnp.float32).reshape(14, 14, K_RAW)
    m = w[None, :, None, :, None] * eye3[:, None, :, None, :]     # (14,2,14,2,196)
    return m.reshape(IN_DIM, K_RAW)                                # (784, 196)


def lenet_kernel(x_ref, wc_ref, bc_ref, w1_ref, b1_ref, w2_ref, b2_ref, out_ref):
    # Raw image tile -> bf16 for the MXU (accumulation stays f32).
    xb = x_ref[...].astype(jnp.bfloat16)                           # (TILE_B, 784)

    # --- conv1 as matmul: (TILE_B,784)@(784,256) + bias, ReLU ----------------
    # Padded columns 196..255 of wc are zero -> they hold relu(bias) after the
    # bias/ReLU, but multiply all-zero rows of w1, so they contribute 0.
    conv = jnp.dot(xb, wc_ref[...], preferred_element_type=jnp.float32)
    conv = jnp.maximum(conv + bc_ref[0], 0.0)                      # (TILE_B, 256) f32

    # --- fc1: (TILE_B,256)@(256,64) + b1, ReLU (MXU, bf16 inputs) ------------
    h = jnp.dot(conv.astype(jnp.bfloat16), w1_ref[...],
                preferred_element_type=jnp.float32)
    h = jnp.maximum(h + b1_ref[...], 0.0)                          # (TILE_B, 64) f32

    # --- fc2: (TILE_B,64)@(64,128) + b2 (MXU, lane-dense output) -------------
    out = jnp.dot(h.astype(jnp.bfloat16), w2_ref[...],
                  preferred_element_type=jnp.float32)
    out_ref[...] = out + b2_ref[...]                               # (TILE_B, 128) f32


def lenet_forward(x, params, *, tile_b=2048):
    """x: (B, 1, 28, 28) float32 NCHW. Returns (B, 10) float32 logits."""
    conv_w, conv_b, fc1_w, fc1_b, fc2_w, fc2_b = params
    B = x.shape[0]
    assert x.shape == (B, 1, 28, 28)

    # Batch tiling: multiple of 8 (sublane), capped at `tile_b`.
    tile_b = min(tile_b, _round_up(B, 8))
    b_pad = _round_up(B, tile_b)
    nb = b_pad // tile_b

    # Free, contiguous reshape — no im2col, no HBM round trip.
    xf = x.reshape(B, IN_DIM).astype(jnp.float32)                  # (B, 784)
    if b_pad != B:
        xf = jnp.pad(xf, ((0, b_pad - B), (0, 0)))

    # Resident weights (bf16 for the MXU; tiny, DMA'd once per grid).
    wc = jnp.pad(_conv_as_matmul(conv_w),
                 ((0, 0), (0, K_PAD - K_RAW))).astype(jnp.bfloat16)        # (784, 256)
    bc = conv_b.reshape(1).astype(jnp.float32)                             # (1,)  SMEM
    w1 = jnp.pad(fc1_w.T.astype(jnp.float32),
                 ((0, K_PAD - K_RAW), (0, 0))).astype(jnp.bfloat16)        # (256, 64)
    b1 = fc1_b.reshape(1, H_DIM).astype(jnp.float32)                       # (1, 64)
    w2 = jnp.pad(fc2_w.T.astype(jnp.float32),
                 ((0, 0), (0, N_PAD - N_RAW))).astype(jnp.bfloat16)        # (64, 128)
    b2 = jnp.pad(fc2_b.reshape(1, N_RAW).astype(jnp.float32),
                 ((0, 0), (0, N_PAD - N_RAW)))                             # (1, 128)

    flops = b_pad * 2 * (IN_DIM * K_PAD + K_PAD * H_DIM + H_DIM * N_PAD)
    bytes_accessed = (xf.size * 4 + b_pad * N_PAD * 4
                      + (wc.size + w1.size + w2.size) * 2
                      + (bc.size + b1.size + b2.size) * 4)

    out_padded = pl.pallas_call(
        lenet_kernel,
        out_shape=jax.ShapeDtypeStruct((b_pad, N_PAD), jnp.float32),
        grid=(nb,),
        in_specs=[
            pl.BlockSpec((tile_b, IN_DIM), lambda i: (i, 0)),   # image tile (streamed)
            pl.BlockSpec((IN_DIM, K_PAD), lambda i: (0, 0)),    # conv-as-matmul W (resident)
            pl.BlockSpec(memory_space=pltpu.SMEM),              # conv bias scalar
            pl.BlockSpec((K_PAD, H_DIM), lambda i: (0, 0)),     # w1 (resident)
            pl.BlockSpec((1, H_DIM), lambda i: (0, 0)),         # b1 (resident)
            pl.BlockSpec((H_DIM, N_PAD), lambda i: (0, 0)),     # w2 (resident)
            pl.BlockSpec((1, N_PAD), lambda i: (0, 0)),         # b2 (resident)
        ],
        out_specs=pl.BlockSpec((tile_b, N_PAD), lambda i: (i, 0)),
        compiler_params=pltpu.CompilerParams(
            dimension_semantics=("parallel",),
            vmem_limit_bytes=48 * 1024 * 1024),
        cost_estimate=pl.CostEstimate(
            flops=flops, transcendentals=0, bytes_accessed=bytes_accessed),
    )(xf, wc, bc, w1, b1, w2, b2)

    return out_padded[:B, :N_RAW]


def lenet_reference(x, params):
    """Pure-JAX f32 reference mirroring the PyTorch forward, for a sanity check."""
    conv_w, conv_b, fc1_w, fc1_b, fc2_w, fc2_b = params
    B = x.shape[0]
    x2 = x[:, 0]
    conv = (x2[:, 0::2, 0::2] * conv_w[0, 0, 0, 0]
            + x2[:, 0::2, 1::2] * conv_w[0, 0, 0, 1]
            + x2[:, 1::2, 0::2] * conv_w[0, 0, 1, 0]
            + x2[:, 1::2, 1::2] * conv_w[0, 0, 1, 1]
            + conv_b[0])
    conv = jnp.maximum(conv, 0.0).reshape(B, K_RAW)
    h = jnp.maximum(conv @ fc1_w.T + fc1_b, 0.0)
    return h @ fc2_w.T + fc2_b


def init_params(key):
    """Deterministic synthetic parameters with the LeNet.__init__ shapes."""
    k = jax.random.split(key, 6)
    conv_w = 0.5 * jax.random.normal(k[0], (1, 1, 2, 2), jnp.float32)   # Conv2d(1,1,2,2)
    conv_b = 0.1 * jax.random.normal(k[1], (1,), jnp.float32)
    fc1_w = 0.05 * jax.random.normal(k[2], (64, K_RAW), jnp.float32)    # Linear(196, 64)
    fc1_b = 0.05 * jax.random.normal(k[3], (64,), jnp.float32)
    fc2_w = 0.1 * jax.random.normal(k[4], (10, 64), jnp.float32)        # Linear(64, 10)
    fc2_b = 0.1 * jax.random.normal(k[5], (10,), jnp.float32)
    return conv_w, conv_b, fc1_w, fc1_b, fc2_w, fc2_b


if __name__ == "__main__":
    key = jax.random.PRNGKey(0)
    k_x, k_p = jax.random.split(key)
    params = init_params(k_p)

    # bf16 MXU path: compare against the f32 reference with relaxed tolerance
    # (accumulation is f32; only input/weight quantization differs).
    ATOL = RTOL = 5e-2

    # Small primary test (spatial size fixed at 28x28 by fc1's 14*14 input dim).
    B = 2
    x = jax.random.normal(k_x, (B, 1, 28, 28), jnp.float32)
    out = jax.block_until_ready(lenet_forward(x, params))
    assert out.shape == (B, 10) and out.dtype == jnp.float32
    ref = jax.block_until_ready(lenet_reference(x, params))
    if not jnp.allclose(out, ref, atol=ATOL, rtol=RTOL):
        raise AssertionError("Pallas LeNet output mismatch vs JAX reference (B=2)")

    # Exercise the batch grid + padding path (3 grid steps, padded last tile).
    B2 = 20
    x2 = jax.random.normal(k_x, (B2, 1, 28, 28), jnp.float32)
    out2 = jax.block_until_ready(lenet_forward(x2, params, tile_b=8))
    ref2 = jax.block_until_ready(lenet_reference(x2, params))
    if not jnp.allclose(out2, ref2, atol=ATOL, rtol=RTOL):
        raise AssertionError("Pallas LeNet output mismatch vs JAX reference (gridded)")

    print("KERNEL_OK")
</pallas_src>

<mosaic_0001>
module attributes {stable_mosaic.version = 11 : i64} {
  func.func @lenet_kernel(%arg0: i32, %arg1: memref<8x784xf32, #tpu.memory_space<vmem>>, %arg2: memref<784x256xbf16, #tpu.memory_space<vmem>>, %arg3: memref<1xf32, #tpu.memory_space<smem>>, %arg4: memref<256x64xbf16, #tpu.memory_space<vmem>>, %arg5: memref<1x64xf32, #tpu.memory_space<vmem>>, %arg6: memref<64x128xbf16, #tpu.memory_space<vmem>>, %arg7: memref<1x128xf32, #tpu.memory_space<vmem>>, %arg8: memref<8x128xf32, #tpu.memory_space<vmem>>) attributes {dimension_semantics = [#tpu.dimension_semantics<parallel>], iteration_bounds = array<i64: 1>, scalar_prefetch = 0 : i64, scratch_operands = 0 : i64, tpu.core_type = #tpu.core_type<tc>, window_params = [{transform_indices = @transform_0, window_bounds = array<i64: 8, 784>}, {pipeline_mode = #tpu.pipeline_mode<synchronous>, transform_indices = @transform_1, window_bounds = array<i64: 784, 256>}, {transform_indices = @transform_2, window_bounds = array<i64: 1>}, {pipeline_mode = #tpu.pipeline_mode<synchronous>, transform_indices = @transform_3, window_bounds = array<i64: 256, 64>}, {pipeline_mode = #tpu.pipeline_mode<synchronous>, transform_indices = @transform_4, window_bounds = array<i64: 1, 64>}, {pipeline_mode = #tpu.pipeline_mode<synchronous>, transform_indices = @transform_5, window_bounds = array<i64: 64, 128>}, {pipeline_mode = #tpu.pipeline_mode<synchronous>, transform_indices = @transform_6, window_bounds = array<i64: 1, 128>}, {transform_indices = @transform_7, window_bounds = array<i64: 8, 128>}]} {
    %c0 = arith.constant 0 : index
    %c0_0 = arith.constant 0 : index
    %0 = vector.load %arg1[%c0, %c0_0] : memref<8x784xf32, #tpu.memory_space<vmem>>, vector<8x784xf32>
    %1 = arith.truncf %0 : vector<8x784xf32> to vector<8x784xbf16>
    %c0_1 = arith.constant 0 : index
    %c0_2 = arith.constant 0 : index
    %2 = vector.load %arg2[%c0_1, %c0_2] : memref<784x256xbf16, #tpu.memory_space<vmem>>, vector<784x256xbf16>
    %cst = arith.constant dense<0.000000e+00> : vector<8x256xf32>
    %3 = tpu.matmul %1, %2, %cst {dimension_numbers = #tpu.dot_dimension_numbers<[1], [0], [0], [1], [0, 0, 1, 1], [], []>} : vector<8x784xbf16>, vector<784x256xbf16>, vector<8x256xf32> -> vector<8x256xf32>
    %c0_3 = arith.constant 0 : index
    %4 = memref.load %arg3[%c0_3] : memref<1xf32, #tpu.memory_space<smem>>
    %5 = vector.broadcast %4 : f32 to vector<8x256xf32>
    %6 = arith.addf %3, %5 : vector<8x256xf32>
    %cst_4 = arith.constant 0.000000e+00 : f32
    %7 = vector.broadcast %cst_4 : f32 to vector<8x256xf32>
    %8 = arith.maximumf %6, %7 : vector<8x256xf32>
    %9 = arith.truncf %8 : vector<8x256xf32> to vector<8x256xbf16>
    %c0_5 = arith.constant 0 : index
    %c0_6 = arith.constant 0 : index
    %10 = vector.load %arg4[%c0_5, %c0_6] : memref<256x64xbf16, #tpu.memory_space<vmem>>, vector<256x64xbf16>
    %cst_7 = arith.constant dense<0.000000e+00> : vector<8x64xf32>
    %11 = tpu.matmul %9, %10, %cst_7 {dimension_numbers = #tpu.dot_dimension_numbers<[1], [0], [0], [1], [0, 0, 1, 1], [], []>} : vector<8x256xbf16>, vector<256x64xbf16>, vector<8x64xf32> -> vector<8x64xf32>
    %c0_8 = arith.constant 0 : index
    %c0_9 = arith.constant 0 : index
    %12 = vector.load %arg5[%c0_8, %c0_9] : memref<1x64xf32, #tpu.memory_space<vmem>>, vector<1x64xf32>
    %13 = vector.broadcast %12 : vector<1x64xf32> to vector<8x64xf32>
    %14 = arith.addf %11, %13 : vector<8x64xf32>
    %cst_10 = arith.constant 0.000000e+00 : f32
    %15 = vector.broadcast %cst_10 : f32 to vector<8x64xf32>
    %16 = arith.maximumf %14, %15 : vector<8x64xf32>
    %17 = arith.truncf %16 : vector<8x64xf32> to vector<8x64xbf16>
    %c0_11 = arith.constant 0 : index
    %c0_12 = arith.constant 0 : index
    %18 = vector.load %arg6[%c0_11, %c0_12] : memref<64x128xbf16, #tpu.memory_space<vmem>>, vector<64x128xbf16>
    %cst_13 = arith.constant dense<0.000000e+00> : vector<8x128xf32>
    %19 = tpu.matmul %17, %18, %cst_13 {dimension_numbers = #tpu.dot_dimension_numbers<[1], [0], [0], [1], [0, 0, 1, 1], [], []>} : vector<8x64xbf16>, vector<64x128xbf16>, vector<8x128xf32> -> vector<8x128xf32>
    %c0_14 = arith.constant 0 : index
    %c0_15 = arith.constant 0 : index
    %20 = vector.load %arg7[%c0_14, %c0_15] : memref<1x128xf32, #tpu.memory_space<vmem>>, vector<1x128xf32>
    %21 = vector.broadcast %20 : vector<1x128xf32> to vector<8x128xf32>
    %22 = arith.addf %19, %21 : vector<8x128xf32>
    %c0_16 = arith.constant 0 : index
    %c0_17 = arith.constant 0 : index
    %23 = vector.load %arg8[%c0_16, %c0_17] : memref<8x128xf32, #tpu.memory_space<vmem>>, vector<8x128xf32>
    tpu.vector_store %arg8[%c0_16, %c0_17], %22 {strides = array<i32>} : memref<8x128xf32, #tpu.memory_space<vmem>>, vector<8x128xf32>,
    return
  }
  func.func @transform_0(%arg0: i32) -> (i32, i32) {
    %c0_i32 = arith.constant 0 : i32
    %c0_i32_0 = arith.constant 0 : i32
    return %arg0, %c0_i32 : i32, i32
  }
  func.func @transform_1(%arg0: i32) -> (i32, i32) {
    %c0_i32 = arith.constant 0 : i32
    %c0_i32_0 = arith.constant 0 : i32
    %c0_i32_1 = arith.constant 0 : i32
    return %c0_i32, %c0_i32_0 : i32, i32
  }
  func.func @transform_2(%arg0: i32) -> i32 {
    %c0_i32 = arith.constant 0 : i32
    %c0_i32_0 = arith.constant 0 : i32
    return %c0_i32 : i32
  }
  func.func @transform_3(%arg0: i32) -> (i32, i32) {
    %c0_i32 = arith.constant 0 : i32
    %c0_i32_0 = arith.constant 0 : i32
    %c0_i32_1 = arith.constant 0 : i32
    return %c0_i32, %c0_i32_0 : i32, i32
  }
  func.func @transform_4(%arg0: i32) -> (i32, i32) {
    %c0_i32 = arith.constant 0 : i32
    %c0_i32_0 = arith.constant 0 : i32
    %c0_i32_1 = arith.constant 0 : i32
    return %c0_i32, %c0_i32_0 : i32, i32
  }
  func.func @transform_5(%arg0: i32) -> (i32, i32) {
    %c0_i32 = arith.constant 0 : i32
    %c0_i32_0 = arith.constant 0 : i32
    %c0_i32_1 = arith.constant 0 : i32
    return %c0_i32, %c0_i32_0 : i32, i32
  }
  func.func @transform_6(%arg0: i32) -> (i32, i32) {
    %c0_i32 = arith.constant 0 : i32
    %c0_i32_0 = arith.constant 0 : i32
    %c0_i32_1 = arith.constant 0 : i32
    return %c0_i32, %c0_i32_0 : i32, i32
  }
  func.func @transform_7(%arg0: i32) -> (i32, i32) {
    %c0_i32 = arith.constant 0 : i32
    %c0_i32_0 = arith.constant 0 : i32
    return %arg0, %c0_i32 : i32, i32
  }
}

</mosaic_0001>

<bundles_post_ra>
// kernel: tpu_custom_call.1
= control target key start
LH: loop header
LB: loop body
LE: loop exit
PB: predicated region body
PF: predicated region fallthrough
CT: control target
= control target key end

     0   :  { %13 = vsyncpa [#allocation4], 0  ;;  %s1649_s0 = inlined_call_operand.vmem [shape: f32[8,784], index: 0, kind: input, shape index: {}]   ;;  %s1650_s1 = inlined_call_operand.hbm [shape: bf16[784,256], index: 1, kind: input, shape index: {}]   ;;  %s1651_s2 = inlined_call_operand.<no memory space> [shape: f32[1], index: 2, kind: input, shape index: {}]   ;;  %s1652_s3 = inlined_call_operand.vmem [shape: bf16[256,64], index: 3, kind: input, shape index: {}]   ;;  %s1653_s4 = inlined_call_operand.vmem [shape: f32[1,64], index: 4, kind: input, shape index: {}]   ;;  %s1654_s5 = inlined_call_operand.vmem [shape: bf16[64,128], index: 5, kind: input, shape index: {}]   ;;  %s1655_s6 = inlined_call_operand.vmem [shape: f32[1,128], index: 6, kind: input, shape index: {}]   ;;  %s1656_s7 = inlined_call_operand.hbm [shape: f32[8,128], index: 7, kind: output, shape index: {}]  }
   0x1   :  { %14 = vsyncpa [#allocation5], 0  ;;  %s1488_s24 = smov [#allocation3]   ;;  %s1440_s28 = scalar_lea.hbm %s1650_s1, 12544 }
   0x2   :  { %s22_s25 = sshll.u32 %s1488_s24, 4  ;;  %p1441_p0 = scmp.ne.s32.totalorder %s1650_s1, %s1440_s28  ;;  %s23_s25 = int_to_ptr.vmem [resolvable:$true] %s22_s25 }
   0x3   :  { %p1444_p1 = scmp.lt.u32.totalorder %s1440_s28, %s1650_s1 }
   0x5   :  { %p1446_p2 = pnand %p1444_p1, %p1441_p0 }
   0x7   :  { %1449 = shalt.err (!%p1446_p2)
}
   0x8   :  { %s1450_s10 = scalar_lea.vmem %s23_s25, 12544  ;;  %p1455_p4 = scmp.lt.s32.totalorder %s23_s25, %s23_s25 }
   0x9   :  { %p1451_p3 = scmp.ne.s32.totalorder %s23_s25, %s1450_s10  ;;  %p1456_p5 = scmp.lt.s32.totalorder %s1450_s10, %s1450_s10 }
   0xb   :  { %p1457_p6 = por %p1456_p5, %p1455_p4 }
   0xd   :  { %p1458_p7 = pnand %p1457_p6, %p1451_p3 }
   0xf   :  { %1461 = shalt.err (!%p1458_p7)
}
  0x10   :  { %s1489_s11 = smov 128   ;;  %s1490_s12 = smov 8  }
  0x11   :  { %28 = dma.hbm_to_vmem [thread:$0]  %s1650_s1, 12544, %s23_s25, [#allocation4], %s1489_s11, %s1489_s11, %s1490_s12  }
  0x12   :  { %1484 = dma.done.wait [#allocation4], 12544  }
  0x13   :  { %1485 = vsyncadd [#allocation4], 4294954752  ;;  %v1273_v0 = vld [vmem:[#allocation3 + $0x104] ss:$8 sps:$4 sm:$0xff]   ;;  %v1275_v1 = vld [vmem:[#allocation3 + $0x100] ss:$8 sps:$4 sm:$0xff]  }
  0x14   :  { %692 = vmatprep.subr.bf16.mxu0 %v1273_v0  ;;  %v1276_v2 = vld [vmem:[#allocation3 + $0x114] ss:$8 sps:$4 sm:$0xff]   ;;  %v1278_v3 = vld [vmem:[#allocation3 + $0x110] ss:$8 sps:$4 sm:$0xff]   ;;  %v1279_v4 = vld [vmem:[#allocation3 + $0x124] ss:$8 sps:$4 sm:$0xff]  }
  0x15   :  { %693 = vmatpush1.bf16.msra.mxu0 %v1275_v1  ;;  %v1281_v5 = vld [vmem:[#allocation3 + $0x120] ss:$8 sps:$4 sm:$0xff]   ;;  %v1282_v6 = vld [vmem:[#allocation3 + $0x134] ss:$8 sps:$4 sm:$0xff]   ;;  %v1284_v7 = vld [vmem:[#allocation3 + $0x130] ss:$8 sps:$4 sm:$0xff]  }
  0x16   :  { %694 = vmatprep.subr.bf16.mxu0 %v1276_v2  ;;  %v1285_v8 = vld [vmem:[#allocation3 + $0x144] ss:$8 sps:$4 sm:$0xff]   ;;  %v1287_v9 = vld [vmem:[#allocation3 + $0x140] ss:$8 sps:$4 sm:$0xff]   ;;  %v1288_v10 = vld [vmem:[#allocation3 + $0x154] ss:$8 sps:$4 sm:$0xff]  }
  0x17   :  { %v1290_v11 = vld [vmem:[#allocation3 + $0x150] ss:$8 sps:$4 sm:$0xff]   ;;  %v1315_v12 = vld [vmem:[#allocation3 + $0x4] ss:$8 sps:$4 sm:$0xff]   ;;  %v1317_v13 = vld [vmem:[#allocation3] ss:$8 sps:$4 sm:$0xff]  }
  0x18   :  { %v1291_v14 = vld [vmem:[#allocation3 + $0x164] ss:$8 sps:$4 sm:$0xff]   ;;  %651 = vmatprep.subr.bf16.mxu1 %v1315_v12  ;;  %v1321_v15 = vld [vmem:[#allocation3 + $0x14] ss:$8 sps:$4 sm:$0xff]   ;;  %v1323_v16 = vld [vmem:[#allocation3 + $0x10] ss:$8 sps:$4 sm:$0xff]  }
  0x19   :  { %695 = vmatpush1.bf16.msra.mxu0 %v1278_v3  ;;  %652 = vmatpush1.bf16.msra.mxu1 %v1317_v13  ;;  %v1293_v17 = vld [vmem:[#allocation3 + $0x160] ss:$8 sps:$4 sm:$0xff]   ;;  %v1294_v18 = vld [vmem:[#allocation3 + $0x174] ss:$8 sps:$4 sm:$0xff]   ;;  %v1327_v19 = vld [vmem:[#allocation3 + $0x24] ss:$8 sps:$4 sm:$0xff]  }
  0x1a   :  { %696 = vmatprep.subr.bf16.mxu0 %v1279_v4  ;;  %653 = vmatprep.subr.bf16.mxu1 %v1321_v15  ;;  %v46_v20 = vld [vmem:[%s1649_s0 + $0x18] sm:$0xff]  ;;  %v1329_v21 = vld [vmem:[#allocation3 + $0x20] ss:$8 sps:$4 sm:$0xff]   ;;  %v1297_v24 = vld [vmem:[#allocation3 + $0x184] ss:$8 sps:$4 sm:$0xff]   ;;  %vm647_vm0 = vcmask 130048  }
  0x1b   :  { %v53_v22 = vpack.c.bf16 %v46_v20, %v46_v20  ;;  %v1296_v23 = vld [vmem:[#allocation3 + $0x170] ss:$8 sps:$4 sm:$0xff]   ;;  %v1333_v25 = vld [vmem:[#allocation3 + $0x34] ss:$8 sps:$4 sm:$0xff]   ;;  %v1299_v26 = vld [vmem:[#allocation3 + $0x180] ss:$8 sps:$4 sm:$0xff]  }
  0x1c   :  { %v1335_v27 = vld [vmem:[#allocation3 + $0x30] ss:$8 sps:$4 sm:$0xff]   ;;  %v1339_v28 = vld [vmem:[#allocation3 + $0x44] ss:$8 sps:$4 sm:$0xff]   ;;  %v1300_v29 = vld [vmem:[#allocation3 + $0x194] ss:$8 sps:$4 sm:$0xff]  }
  0x1d   :  { %697 = vmatpush1.bf16.msra.mxu0 %v1281_v5  ;;  %654 = vmatpush1.bf16.msra.mxu1 %v1323_v16  ;;  %v1302_v30 = vld [vmem:[#allocation3 + $0x190] ss:$8 sps:$4 sm:$0xff]   ;;  %v1341_v31 = vld [vmem:[#allocation3 + $0x40] ss:$8 sps:$4 sm:$0xff]   ;;  %v1345_v32 = vld [vmem:[#allocation3 + $0x54] ss:$8 sps:$4 sm:$0xff]  }
  0x1e   :  { %698 = vmatprep.subr.bf16.mxu0 %v1282_v6  ;;  %655 = vmatprep.subr.bf16.mxu1 %v1327_v19  ;;  %v1303_v33 = vld [vmem:[#allocation3 + $0x1a4] ss:$8 sps:$4 sm:$0xff]   ;;  %v1305_v34 = vld [vmem:[#allocation3 + $0x1a0] ss:$8 sps:$4 sm:$0xff]   ;;  %v1347_v35 = vld [vmem:[#allocation3 + $0x50] ss:$8 sps:$4 sm:$0xff]  }
  0x1f   :  { %724 = vmatprep.mubr.bf16.mxu0 %v53_v22  ;;  %v1351_v36 = vld [vmem:[#allocation3 + $0x64] ss:$8 sps:$4 sm:$0xff]   ;;  %v1306_v37 = vld [vmem:[#allocation3 + $0x1b4] ss:$8 sps:$4 sm:$0xff]   ;;  %v1308_v38 = vld [vmem:[#allocation3 + $0x1b0] ss:$8 sps:$4 sm:$0xff]  }
  0x20   :  { %v1353_v39 = vld [vmem:[#allocation3 + $0x60] ss:$8 sps:$4 sm:$0xff]   ;;  %v1357_v40 = vld [vmem:[#allocation3 + $0x74] ss:$8 sps:$4 sm:$0xff]   ;;  %v1309_v41 = vld [vmem:[#allocation3 + $0x1c4] ss:$8 sps:$4 sm:$0xff]  }
  0x21   :  { %699 = vmatpush1.bf16.msra.mxu0 %v1284_v7  ;;  %656 = vmatpush1.bf16.msra.mxu1 %v1329_v21  ;;  %v1311_v42 = vld [vmem:[#allocation3 + $0x1c0] ss:$8 sps:$4 sm:$0xff]   ;;  %v1359_v43 = vld [vmem:[#allocation3 + $0x70] ss:$8 sps:$4 sm:$0xff]   ;;  %v1363_v44 = vld [vmem:[#allocation3 + $0x84] ss:$8 sps:$4 sm:$0xff]  }
  0x22   :  { %700 = vmatprep.subr.bf16.mxu0 %v1285_v8  ;;  %657 = vmatprep.subr.bf16.mxu1 %v1333_v25  ;;  %v1312_v45 = vld [vmem:[#allocation3 + $0x1d4] ss:$8 sps:$4 sm:$0xff]   ;;  %v1314_v46 = vld [vmem:[#allocation3 + $0x1d0] ss:$8 sps:$4 sm:$0xff]   ;;  %v1365_v47 = vld [vmem:[#allocation3 + $0x80] ss:$8 sps:$4 sm:$0xff]  }
  0x23   :  { %v1369_v48 = vld [vmem:[#allocation3 + $0x94] ss:$8 sps:$4 sm:$0xff]   ;;  %v1318_v49 = vld [vmem:[#allocation3 + $0x1e4] ss:$8 sps:$4 sm:$0xff]   ;;  %v1320_v50 = vld [vmem:[#allocation3 + $0x1e0] ss:$8 sps:$4 sm:$0xff]  }
  0x24   :  { %v1371_v51 = vld [vmem:[#allocation3 + $0x90] ss:$8 sps:$4 sm:$0xff]   ;;  %v1375_v52 = vld [vmem:[#allocation3 + $0xa4] ss:$8 sps:$4 sm:$0xff]   ;;  %v1324_v53 = vld [vmem:[#allocation3 + $0x1f4] ss:$8 sps:$4 sm:$0xff]  }
  0x25   :  { %701 = vmatpush1.bf16.msra.mxu0 %v1287_v9  ;;  %658 = vmatpush1.bf16.msra.mxu1 %v1335_v27  ;;  %v1326_v54 = vld [vmem:[#allocation3 + $0x1f0] ss:$8 sps:$4 sm:$0xff]   ;;  %v1377_v56 = vld [vmem:[#allocation3 + $0xa0] ss:$8 sps:$4 sm:$0xff]   ;;  %v1381_v57 = vld [vmem:[#allocation3 + $0xb4] ss:$8 sps:$4 sm:$0xff]  }
  0x26   :  { %702 = vmatprep.subr.bf16.mxu0 %v1288_v10  ;;  %659 = vmatprep.subr.bf16.mxu1 %v1339_v28  ;;  %v45_v55 = vld [vmem:[%s1649_s0 + $0x10] sm:$0xff]  ;;  %v1332_v58 = vld [vmem:[#allocation3 + $0x204] ss:$8 sps:$4 sm:$0xff]   ;;  %v1330_v62 = vld [vmem:[#allocation3 + $0x200] ss:$8 sps:$4 sm:$0xff]   ;;  %vm1493_vm1 = vmmov 0  }
  0x27   :  { %v52_v59 = vpack.c.bf16 %v45_v55, %v45_v55  ;;  %v1383_v60 = vld [vmem:[#allocation3 + $0xb0] ss:$8 sps:$4 sm:$0xff]   ;;  %v44_v61 = vld [vmem:[%s1649_s0 + $0x8] sm:$0xff]  ;;  %v1338_v1 = vld [vmem:[#allocation3 + $0x214] ss:$8 sps:$4 sm:$0xff]   ;;  %vm1035_vm2 = vcmask 523264  }
  0x28   :  { %v1387_v63 = vld [vmem:[#allocation3 + $0xc4] ss:$8 sps:$4 sm:$0xff]   ;;  %v51_v0 = vpack.c.bf16 %v44_v61, %v44_v61  ;;  %v1389_v2 = vld [vmem:[#allocation3 + $0xc0] ss:$8 sps:$4 sm:$0xff]   ;;  %v1336_v4 = vld [vmem:[#allocation3 + $0x210] ss:$8 sps:$4 sm:$0xff]  }
  0x29   :  { %703 = vmatpush1.bf16.msra.mxu0 %v1290_v11  ;;  %660 = vmatpush1.bf16.msra.mxu1 %v1341_v31  ;;  %v48_v3 = vld [vmem:[%s1649_s0 + $0x28] sm:$0xff]  ;;  %v1393_v5 = vld [vmem:[#allocation3 + $0xd4] ss:$8 sps:$4 sm:$0xff]   ;;  %v1395_v10 = vld [vmem:[#allocation3 + $0xd0] ss:$8 sps:$4 sm:$0xff]  }
  0x2a   :  { %704 = vmatprep.subr.bf16.mxu0 %v1291_v14  ;;  %661 = vmatprep.subr.bf16.mxu1 %v1345_v32  ;;  %v55_v6 = vpack.c.bf16 %v48_v3, %v48_v3  ;;  %v1344_v7 = vld [vmem:[#allocation3 + $0x224] ss:$8 sps:$4 sm:$0xff]   ;;  %v1342_v8 = vld [vmem:[#allocation3 + $0x220] ss:$8 sps:$4 sm:$0xff]   ;;  %v1350_v9 = vld [vmem:[#allocation3 + $0x234] ss:$8 sps:$4 sm:$0xff]  }
  0x2b   :  { %683 = vmatprep.mubr.bf16.mxu1 %v51_v0  ;;  %v1399_v11 = vld [vmem:[#allocation3 + $0xe4] ss:$8 sps:$4 sm:$0xff]   ;;  %v1401_v12 = vld [vmem:[#allocation3 + $0xe0] ss:$8 sps:$4 sm:$0xff]   ;;  %v1348_v13 = vld [vmem:[#allocation3 + $0x230] ss:$8 sps:$4 sm:$0xff]  }
  0x2c   :  { %v1405_v14 = vld [vmem:[#allocation3 + $0xf4] ss:$8 sps:$4 sm:$0xff]   ;;  %v1356_v15 = vld [vmem:[#allocation3 + $0x244] ss:$8 sps:$4 sm:$0xff]   ;;  %v1407_v16 = vld [vmem:[#allocation3 + $0xf0] ss:$8 sps:$4 sm:$0xff]  }
  0x2d   :  { %705 = vmatpush1.bf16.msra.mxu0 %v1293_v17  ;;  %662 = vmatpush1.bf16.msra.mxu1 %v1347_v35  ;;  %v43_v17 = vld [vmem:[%s1649_s0] sm:$0xff]  ;;  %v1362_v20 = vld [vmem:[#allocation3 + $0x254] ss:$8 sps:$4 sm:$0xff]   ;;  %v1372_v32 = vld [vmem:[#allocation3 + $0x270] ss:$8 sps:$4 sm:$0xff]  }
  0x2e   :  { %706 = vmatprep.subr.bf16.mxu0 %v1294_v18  ;;  %663 = vmatprep.subr.bf16.mxu1 %v1351_v36  ;;  %v1354_v18 = vld [vmem:[#allocation3 + $0x240] ss:$8 sps:$4 sm:$0xff]   ;;  %v1416_v19 = vld [vmem:[#allocation3 + $0x304] ss:$8 sps:$4 sm:$0xff]   ;;  %v50_v22 = vpack.c.bf16 %v43_v17, %v43_v17  ;;  %v49_v27 = vld [vmem:[%s1649_s0 + $0x30] sm:$0xff] }
  0x2f   :  { %v1414_v21 = vld [vmem:[#allocation3 + $0x300] ss:$8 sps:$4 sm:$0xff]   ;;  %v1368_v25 = vld [vmem:[#allocation3 + $0x264] ss:$8 sps:$4 sm:$0xff]   ;;  %v1426_v55 = vld [vmem:[%s1652_s3 + $0x58] sm:$0xff]  }
  0x30   :  { %v1366_v28 = vld [vmem:[#allocation3 + $0x260] ss:$8 sps:$4 sm:$0xff]   ;;  %v1432_v61 = vld [vmem:[%s1652_s3 + $0x70] sm:$0xff]   ;;  %v1435_v0 = vld [vmem:[%s1652_s3 + $0x38] sm:$0xff]  }
  0x31   :  { %707 = vmatpush1.bf16.msra.mxu0 %v1296_v23  ;;  %664 = vmatpush1.bf16.msra.mxu1 %v1353_v39  ;;  %v1360_v23 = vld [vmem:[#allocation3 + $0x250] ss:$8 sps:$4 sm:$0xff]   ;;  %v1421_v31 = vld [vmem:[%s1652_s3] sm:$0xff]   ;;  %v1423_v35 = vld [vmem:[%s1652_s3 + $0x8] sm:$0xff]  }
  0x32   :  { %708 = vmatprep.subr.bf16.mxu0 %v1297_v24  ;;  %665 = vmatprep.subr.bf16.mxu1 %v1357_v40  ;;  %v1420_v24 = vld [vmem:[%s1652_s3 + $0x40] sm:$0xff]   ;;  %v1425_v39 = vld [vmem:[%s1652_s3 + $0x10] sm:$0xff]  }
  0x33   :  { %v1378_v36 = vld [vmem:[#allocation3 + $0x280] ss:$8 sps:$4 sm:$0xff]   ;;  %v1384_v40 = vld [vmem:[#allocation3 + $0x290] ss:$8 sps:$4 sm:$0xff]  }
  0x35   :  { %709 = vmatpush1.bf16.msra.mxu0 %v1299_v26  ;;  %666 = vmatpush1.bf16.msra.mxu1 %v1359_v43  ;;  %v1491_v26 = vmov 0   ;;  %v1398_v43 = vld [vmem:[#allocation3 + $0x2b4] ss:$8 sps:$4 sm:$0xff]  }
  0x36   :  { %710 = vmatprep.subr.bf16.mxu0 %v1300_v29  ;;  %667 = vmatprep.subr.bf16.mxu1 %v1363_v44  ;;  %v1374_v29 = vld [vmem:[#allocation3 + $0x274] ss:$8 sps:$4 sm:$0xff]   ;;  %v1396_v44 = vld [vmem:[#allocation3 + $0x2b0] ss:$8 sps:$4 sm:$0xff]  }
  0x39   :  { %711 = vmatpush1.bf16.msra.mxu0 %v1302_v30  ;;  %668 = vmatpush1.bf16.msra.mxu1 %v1365_v47  ;;  %v56_v30 = vpack.c.bf16 %v49_v27, %v49_v27  ;;  %v1410_v47 = vld [vmem:[#allocation3 + $0x2d4] ss:$8 sps:$4 sm:$0xff]  }
  0x3a   :  { %712 = vmatprep.subr.bf16.mxu0 %v1303_v33  ;;  %669 = vmatprep.subr.bf16.mxu1 %v1369_v48  ;;  %v1422_v33 = vld [vmem:[%s1652_s3 + $0x48] sm:$0xff]   ;;  %v1408_v48 = vld [vmem:[#allocation3 + $0x2d0] ss:$8 sps:$4 sm:$0xff]  }
  0x3b   :  { %v1438_v27 = vld [vmem:[%s1654_s5 + $0x10] sm:$0xff]  }
  0x3d   :  { %713 = vmatpush1.bf16.msra.mxu0 %v1305_v34  ;;  %670 = vmatpush1.bf16.msra.mxu1 %v1371_v51  ;;  %v1380_v34 = vld [vmem:[#allocation3 + $0x284] ss:$8 sps:$4 sm:$0xff]   ;;  %v1419_v51 = vld [vmem:[#allocation3 + $0x2f4] ss:$8 sps:$4 sm:$0xff]  }
  0x3e   :  { %714 = vmatprep.subr.bf16.mxu0 %v1306_v37  ;;  %671 = vmatprep.subr.bf16.mxu1 %v1375_v52  ;;  %v1424_v37 = vld [vmem:[%s1652_s3 + $0x50] sm:$0xff]  }
  0x3f   :  { %v1417_v52 = vld [vmem:[#allocation3 + $0x2f0] ss:$8 sps:$4 sm:$0xff]  }
  0x41   :  { %715 = vmatpush1.bf16.msra.mxu0 %v1308_v38  ;;  %672 = vmatpush1.bf16.msra.mxu1 %v1377_v56  ;;  %v1386_v38 = vld [vmem:[#allocation3 + $0x294] ss:$8 sps:$4 sm:$0xff]  }
  0x42   :  { %716 = vmatprep.subr.bf16.mxu0 %v1309_v41  ;;  %673 = vmatprep.subr.bf16.mxu1 %v1381_v57  ;;  %v1392_v41 = vld [vmem:[#allocation3 + $0x2a4] ss:$8 sps:$4 sm:$0xff]   ;;  %v1427_v56 = vld [vmem:[%s1652_s3 + $0x18] sm:$0xff]  }
  0x43   :  { %v1428_v57 = vld [vmem:[%s1652_s3 + $0x60] sm:$0xff]  }
  0x45   :  { %717 = vmatpush1.bf16.msra.mxu0 %v1311_v42  ;;  %674 = vmatpush1.bf16.msra.mxu1 %v1383_v60  ;;  %v1390_v42 = vld [vmem:[#allocation3 + $0x2a0] ss:$8 sps:$4 sm:$0xff]  }
  0x46   :  { %718 = vmatprep.subr.bf16.mxu0 %v1312_v45  ;;  %675 = vmatprep.subr.bf16.mxu1 %v1387_v63  ;;  %v1404_v45 = vld [vmem:[#allocation3 + $0x2c4] ss:$8 sps:$4 sm:$0xff]   ;;  %v1434_v63 = vld [vmem:[%s1652_s3 + $0x78] sm:$0xff]  }
  0x47   :  { %v1431_v60 = vld [vmem:[%s1652_s3 + $0x28] sm:$0xff]  }
  0x49   :  { %719 = vmatpush1.bf16.msra.mxu0 %v1314_v46  ;;  %676 = vmatpush1.bf16.msra.mxu1 %v1389_v2  ;;  %v1402_v46 = vld [vmem:[#allocation3 + $0x2c0] ss:$8 sps:$4 sm:$0xff]  }
  0x4a   :  { %720 = vmatprep.subr.bf16.mxu0 %v1318_v49  ;;  %677 = vmatprep.subr.bf16.mxu1 %v1393_v5  ;;  %v1413_v49 = vld [vmem:[#allocation3 + $0x2e4] ss:$8 sps:$4 sm:$0xff]  }
  0x4d   :  { %721 = vmatpush1.bf16.msra.mxu0 %v1320_v50  ;;  %678 = vmatpush1.bf16.msra.mxu1 %v1395_v10  ;;  %v1411_v50 = vld [vmem:[#allocation3 + $0x2e0] ss:$8 sps:$4 sm:$0xff]   ;;  %v156_v10 = vstv %s1651_s2 }
  0x4e   :  { %722 = vmatprep.subr.bf16.mxu0 %v1324_v53  ;;  %679 = vmatprep.subr.bf16.mxu1 %v1399_v11  ;;  %v47_v53 = vld [vmem:[%s1649_s0 + $0x20] sm:$0xff] }
  0x51   :  { %723 = vmatpush1.bf16.msra.mxu0 %v1326_v54  ;;  %680 = vmatpush1.bf16.msra.mxu1 %v1401_v12  ;;  %v54_v54 = vpack.c.bf16 %v47_v53, %v47_v53 }
  0x52   :  { %733 = vmatprep.subr.bf16.mxu0 %v1332_v58  ;;  %681 = vmatprep.subr.bf16.mxu1 %v1405_v14  ;;  %v1429_v58 = vld [vmem:[%s1652_s3 + $0x20] sm:$0xff]  }
  0x54   :  { %725 = vmatmul.mubr.bf16.vlgmr.msra.gmra.mrb[0].mxu0 %v52_v59  ;;  %v1430_v59 = vld [vmem:[%s1652_s3 + $0x68] sm:$0xff]  }
  0x55   :  { %734 = vmatpush1.bf16.msra.mxu0 %v1330_v62  ;;  %765 = vmatprep.mubr.bf16.mxu0 %v55_v6  ;;  %v1433_v62 = vld [vmem:[%s1652_s3 + $0x30] sm:$0xff]  }
  0x56   :  { %735 = vmatprep.subr.bf16.mxu0 %v1338_v1  ;;  %682 = vmatpush1.bf16.msra.mxu1 %v1407_v16  ;;  %v1492_v1 = vmov 0.0  }
  0x57   :  { %774 = vmatprep.subr.bf16.mxu1 %v1416_v19 }
  0x59   :  { %736 = vmatpush1.bf16.msra.mxu0 %v1336_v4  ;;  %684 = vmatmul.mubr.bf16.vlgmr.msra.gmra.mrb[0].mxu1 %v50_v22 }
  0x5a   :  { %737 = vmatprep.subr.bf16.mxu0 %v1344_v7  ;;  %775 = vmatpush1.bf16.msra.mxu1 %v1414_v21 }
  0x5b   :  { %806 = vmatprep.mubr.bf16.mxu1 %v1491_v26  ;;  %1217 = vmatprep.subr.bf16.mxu1 %v1420_v24  ;;  %v1436_v24 = vld [vmem:[%s1654_s5] sm:$0xff]   ;;  %v1437_v26 = vld [vmem:[%s1654_s5 + $0x8] sm:$0xff]  }
  0x5d   :  { %738 = vmatpush1.bf16.msra.mxu0 %v1342_v8 }
  0x5e   :  { %739 = vmatprep.subr.bf16.mxu0 %v1350_v9 }
  0x61   :  { %740 = vmatpush1.bf16.msra.mxu0 %v1348_v13  ;;  %1193 = vmatmul.mubr.msk.bf16.vlgmr.msra.gmra.mrb[4].mxu1 %vm647_vm0, %v56_v30  ;;  %v1194_v30 = vld [vmem:[%s1653_s4] ss:$0 sm:$0xff] }
  0x62   :  { %741 = vmatprep.subr.bf16.mxu0 %v1356_v15  ;;  %1218 = vmatpush3.bf16.msra.mxu1 %v1421_v31 }
  0x63   :  { %1219 = vmatprep.subr.bf16.mxu1 %v1422_v33 }
  0x65   :  { %742 = vmatpush1.bf16.msra.mxu0 %v1354_v18 }
  0x66   :  { %743 = vmatprep.subr.bf16.mxu0 %v1362_v20  ;;  %1220 = vmatpush3.bf16.msra.mxu1 %v1423_v35 }
  0x67   :  { %1221 = vmatprep.subr.bf16.mxu1 %v1424_v37 }
  0x69   :  { %744 = vmatpush1.bf16.msra.mxu0 %v1360_v23 }
  0x6a   :  { %745 = vmatprep.subr.bf16.mxu0 %v1368_v25  ;;  %1222 = vmatpush3.bf16.msra.mxu1 %v1425_v39 }
  0x6b   :  { %1223 = vmatprep.subr.bf16.mxu1 %v1426_v55 }
  0x6d   :  { %746 = vmatpush1.bf16.msra.mxu0 %v1366_v28  ;;  %v1439_v28 = vld [vmem:[%s1654_s5 + $0x18] sm:$0xff]   ;;  %s1494_s5 = smov [#allocation6]  }
  0x6e   :  { %747 = vmatprep.subr.bf16.mxu0 %v1374_v29  ;;  %1224 = vmatpush3.bf16.msra.mxu1 %v1427_v56  ;;  %s1086_s0 = sshll.u32 %s1494_s5, 4  ;;  %s1087_s0 = int_to_ptr.vmem [resolvable:$true] %s1086_s0 }
  0x6f   :  { %1225 = vmatprep.subr.bf16.mxu1 %v1428_v57  ;;  %s1462_s4 = scalar_lea.vmem %s1087_s0, 128  ;;  %p1467_p9 = scmp.lt.s32.totalorder %s1087_s0, %s1087_s0 }
  0x70   :  { %p1463_p8 = scmp.ne.s32.totalorder %s1087_s0, %s1462_s4  ;;  %p1468_p10 = scmp.lt.s32.totalorder %s1462_s4, %s1462_s4 }
  0x71   :  { %748 = vmatpush1.bf16.msra.mxu0 %v1372_v32 }
  0x72   :  { %749 = vmatprep.subr.bf16.mxu0 %v1380_v34  ;;  %1226 = vmatpush3.bf16.msra.mxu1 %v1429_v58  ;;  %p1469_p11 = por %p1468_p10, %p1467_p9 }
  0x73   :  { %1227 = vmatprep.subr.bf16.mxu1 %v1430_v59 }
  0x74   :  { %p1470_p12 = pnand %p1469_p11, %p1463_p8 }
  0x75   :  { %750 = vmatpush1.bf16.msra.mxu0 %v1378_v36 }
  0x76   :  { %751 = vmatprep.subr.bf16.mxu0 %v1386_v38  ;;  %1228 = vmatpush3.bf16.msra.mxu1 %v1431_v60  ;;  %v1211_v38 = vld [vmem:[%s1655_s6] ss:$0 sm:$0xff] }
  0x77   :  { %1229 = vmatprep.subr.bf16.mxu1 %v1432_v61 }
  0x79   :  { %752 = vmatpush1.bf16.msra.mxu0 %v1384_v40 }
  0x7a   :  { %753 = vmatprep.subr.bf16.mxu0 %v1392_v41  ;;  %1230 = vmatpush3.bf16.msra.mxu1 %v1433_v62 }
  0x7b   :  { %1231 = vmatprep.subr.bf16.mxu1 %v1434_v63 }
  0x7d   :  { %754 = vmatpush1.bf16.msra.mxu0 %v1390_v42 }
  0x7e   :  { %755 = vmatprep.subr.bf16.mxu0 %v1398_v43  ;;  %1232 = vmatpush3.bf16.msra.mxu1 %v1435_v0 }
  0x7f   :  { %1244 = vmatprep.subr.bf16.mxu1 %v1492_v1 }
  0x81   :  { %756 = vmatpush1.bf16.msra.mxu0 %v1396_v44 }
  0x82   :  { %757 = vmatprep.subr.bf16.mxu0 %v1404_v45 }
  0x85   :  { %758 = vmatpush1.bf16.msra.mxu0 %v1402_v46 }
  0x86   :  { %759 = vmatprep.subr.bf16.mxu0 %v1410_v47 }
  0x89   :  { %760 = vmatpush1.bf16.msra.mxu0 %v1408_v48 }
  0x8a   :  { %761 = vmatprep.subr.bf16.mxu0 %v1413_v49 }
  0x8d   :  { %762 = vmatpush1.bf16.msra.mxu0 %v1411_v50 }
  0x8e   :  { %763 = vmatprep.subr.bf16.mxu0 %v1419_v51 }
  0x91   :  { %764 = vmatpush1.bf16.msra.mxu0 %v1417_v52 }
  0x94   :  { %766 = vmatmul.mubr.bf16.vlgmr.msra.gmra.mrb[0].mxu0 %v54_v54 }
 0x12c   :  { %v685_v2 = vpop.f32.mrb[0].mxu1 }
 0x12d   :  { %v687_v3 = vpop.f32.mrb[1].mxu1  ;;  %v686_v11 = vadd.f32 %v685_v2, %v156_v10 }
 0x12e   :  { %v689_v4 = vpop.f32.mrb[2].mxu1  ;;  %v688_v12 = vadd.f32 %v687_v3, %v156_v10 }
 0x12f   :  { %v690_v5 = vpop.f32.mrb[3].mxu1 }
 0x134   :  { %v808_v6 = vpop.f32.mrb[4].mxu1 }
 0x135   :  { %v810_v7 = vpop.f32.mrb[5].mxu1 }
 0x136   :  { %v812_v8 = vpop.f32.mrb[6].mxu1 }
 0x137   :  { %v813_v9 = vpop.f32.mrb[7].mxu1 }
 0x167   :  { %v767_v13 = vpop.f32.mrb[0].mxu0 }
 0x168   :  { %v1257_v14 = vadd.f32 %v767_v13, %v686_v11  ;;  %v769_v15 = vpop.f32.mrb[1].mxu0 }
 0x169   :  { %v1260_v16 = vadd.f32 %v769_v15, %v688_v12  ;;  %v771_v17 = vpop.f32.mrb[2].mxu0 }
 0x16a   :  { %v1258_v18 = vadd.f32 %v1257_v14, %v808_v6  ;;  %v772_v19 = vpop.f32.mrb[3].mxu0 }
 0x16b   :  { %v1261_v20 = vadd.f32 %v1260_v16, %v810_v7 }
 0x16c   :  { %v815_v21 = vmax.f32 %v1258_v18, 0.0 }
 0x16d   :  { %v816_v22 = vmax.f32 %v1261_v20, 0.0 }
 0x16e   :  { %v817_v25 = vpack.c.bf16 %v815_v21, %v815_v21 }
 0x16f   :  { %v818_v23 = vpack.c.bf16 %v816_v22, %v816_v22 }
 0x171   :  { %986 = vmatprep.mubr.bf16.mxu1 %v818_v23 }
 0x172   :  { %987 = vmatmul.mubr.bf16.vlgmr.msra.gmra.mrb[8].mxu1 %v817_v25 }
 0x173   :  { %1245 = vmatpush3.bf16.msra.mxu1 %v1436_v24  ;;  %1252 = vmatprep.mubr.msk.bf16.mxu1 %vm1493_vm1, %v1492_v1 }
 0x174   :  { %1246 = vmatprep.subr.bf16.mxu1 %v1492_v1 }
 0x177   :  { %1247 = vmatpush3.bf16.msra.mxu1 %v1437_v26 }
 0x178   :  { %1248 = vmatprep.subr.bf16.mxu1 %v1492_v1 }
 0x17b   :  { %1249 = vmatpush3.bf16.msra.mxu1 %v1438_v27 }
 0x17c   :  { %1250 = vmatprep.subr.bf16.mxu1 %v1492_v1 }
 0x17f   :  { %1251 = vmatpush3.bf16.msra.mxu1 %v1439_v28 }
 0x245   :  { %v1233_v29 = vpop.f32.mrb[8].mxu1 }
 0x246   :  { %v1234_v31 = vpop.f32.mrb[9].mxu1 }
 0x247   :  { %v1235_v32 = vadd.f32 %v1234_v31, %v1233_v29  ;;  %v1236_v33 = vpop.f32.mrb[10].mxu1 }
 0x248   :  { %v1237_v34 = vpop.f32.mrb[11].mxu1 }
 0x249   :  { %v989_v35 = vadd.f32 %v1235_v32, %v1194_v30 }
 0x24b   :  { %v994_v36 = vmax.f32 %v989_v35, 0.0 }
 0x24d   :  { %v995_v37 = vpack.c.bf16 %v994_v36, %v994_v36 }
 0x24f   :  { %1253 = vmatmul.mubr.msk.bf16.vlgmr.msra.gmra.mrb[12].mxu1 %vm1035_vm2, %v995_v37 }
 0x322   :  { %v1073_v39 = vpop.f32.mrb[12].mxu1 }
 0x323   :  { %v1074_v40 = vadd.f32 %v1211_v38, %v1073_v39  ;;  %v1254_v41 = vpop.f32.mrb[13].mxu1 }
 0x324   :  { %v1076_v42 = vpop.f32.mrb[14].mxu1 }
 0x325   :  { %1079 = vst [vmem:[#allocation6] sm:$0xff] %v1074_v40  ;;  %v1255_v43 = vpop.f32.mrb[15].mxu1 }
 0x326   :  { %1473 = shalt.err (!%p1470_p12)
}
 0x327   :  { %s1474_s6 = scalar_lea.hbm %s1656_s7, 128 }
 0x328   :  { %p1475_p13 = scmp.ne.s32.totalorder %s1656_s7, %s1474_s6  ;;  %p1478_p0 = scmp.lt.u32.totalorder %s1474_s6, %s1656_s7 }
 0x32a   :  { %p1480_p1 = pnand %p1478_p0, %p1475_p13 }
 0x32c   :  { %1483 = shalt.err (!%p1480_p1)
}
 0x32d   :  { %1089 = dma.vmem_to_hbm [thread:$0]  %s1087_s0, 128, %s1656_s7, [#allocation5]  }
 0x32e   :  { %1486 = dma.done.wait [#allocation5], 128  }
 0x32f   :  { %1487 = vsyncadd [#allocation5], 4294967168 }
 0x330   :  { %1093 = vsyncpa [#allocation4], 1 }
 0x331   :  { %1094 = vsyncpa [#allocation5], 1 }

</bundles_post_ra>
